<compile_context>
chip_gen: v7x
topology: tpu7x:2x2x1
jax: 0.10.0
libtpu: 0.0.40
codegen_flags: <defaults>
</compile_context>

<pallas_src>
import jax
import jax.numpy as jnp
from jax.experimental import pallas as pl
from jax.experimental.pallas import tpu as pltpu


def _to_2tuple(v):
    return tuple(v) if isinstance(v, (tuple, list)) else (v, v)


def _round_up(x, m):
    return ((x + m - 1) // m) * m


def _cdiv(a, b):
    return -(-a // b)


def _vmem_plan():
    """(working-set budget, vmem_limit_bytes) chosen per TPU generation."""
    try:
        cap = pltpu.get_tpu_info().vmem_capacity_bytes
    except Exception:
        cap = 64 * 1024 * 1024  # conservative: assume a 64-MiB (v7x-class) part
    if cap >= 100 * 1024 * 1024:              # v5e / v6e: 128 MiB per core
        return 56 * 1024 * 1024, 96 * 1024 * 1024
    return 22 * 1024 * 1024, 40 * 1024 * 1024  # v7x: 64 MiB per core


# ---------------------------------------------------------------------------
# Kernels
# ---------------------------------------------------------------------------

def _proj_kernel(p_ref, w_ref, b_ref, o_ref):
    # p_ref: (tm, Kp) bf16  w_ref: (Kp, N) bf16  b_ref: (1, N) f32  o_ref: (tm, N)
    acc = jnp.dot(p_ref[...], w_ref[...], preferred_element_type=jnp.float32)
    o_ref[...] = (acc + b_ref[...]).astype(o_ref.dtype)


def _make_fused_kernel(C, R, ph, Wo, pw, compute_dtype):
    K = C * ph * pw

    def kernel(x_ref, w_ref, b_ref, o_ref):
        # x_ref: (1, C, R, ph, W) raw image strip (W = Wo*pw)
        # w_ref: (K, N) bf16   b_ref: (1, N) f32   o_ref: (1, R*Wo, N)
        a = x_ref[0]                                   # (C, R, ph, W)
        a = a.reshape(C, R, ph, Wo, pw)                # split W -> (Wo, pw)
        a = jnp.transpose(a, (1, 3, 0, 2, 4))          # (R, Wo, C, ph, pw)
        p = a.reshape(R * Wo, K).astype(compute_dtype)  # im2col tile, VMEM only
        acc = jnp.dot(p, w_ref[...], preferred_element_type=jnp.float32)
        o_ref[0] = (acc + b_ref[...]).astype(o_ref.dtype)

    return kernel


# ---------------------------------------------------------------------------
# Wrappers
# ---------------------------------------------------------------------------

def _patch_embed_fused(x, weight, bias, ph, pw, compute_dtype, out_dtype):
    B, C, H, W = x.shape
    Ho, Wo = H // ph, W // pw
    N = weight.shape[0]
    K = C * ph * pw
    budget, vmem_limit = _vmem_plan()
    bx = jnp.dtype(x.dtype).itemsize
    bc = jnp.dtype(compute_dtype).itemsize
    bo = jnp.dtype(out_dtype).itemsize

    # Pick the row-strip height R (in patch rows). R must divide Ho so blocks
    # tile x exactly; keep >= ~4 grid steps (pipelining + dual-TC), then take
    # the largest R whose (conservative) per-step working set fits the budget.
    min_steps = min(4, B * Ho)

    def step_bytes(R):
        rows = _round_up(R * Wo, 8)
        x_blk = 2 * C * R * _round_up(ph, 8) * _round_up(W, 128) * bx
        relay = 2 * C * R * ph * _round_up(Wo, 8) * _round_up(pw, 128) * bx
        pmat = rows * _round_up(K, 128) * max(bc, 2)
        o_blk = 2 * rows * _round_up(N, 128) * bo
        wt = 2 * _round_up(K, 8) * _round_up(N, 128) * bc
        return x_blk + relay + pmat + o_blk + wt + (1 << 20)

    R = 1
    for cand in sorted((d for d in range(1, Ho + 1) if Ho % d == 0), reverse=True):
        if B * (Ho // cand) < min_steps:
            continue
        if step_bytes(cand) <= budget:
            R = cand
            break
    nhb = Ho // R
    rows = R * Wo

    # Free reshape (no data movement; folds into the pallas_call under jit).
    x5 = x.reshape(B, C, Ho, ph, W)
    # Conv2d weight (N, C, ph, pw) -> (K, N); k-order (c, i, j) matches the
    # in-kernel patch tile. Tiny, done once.
    w_mat = weight.reshape(N, K).T.astype(compute_dtype)
    b_mat = bias.reshape(1, N).astype(jnp.float32)

    out = pl.pallas_call(
        _make_fused_kernel(C, R, ph, Wo, pw, compute_dtype),
        out_shape=jax.ShapeDtypeStruct((B * nhb, rows, N), out_dtype),
        grid=(B, nhb),
        in_specs=[
            # (ph, W) are full array dims -> (8,128) block rule is satisfied
            # regardless of patch size / image width.
            pl.BlockSpec((1, C, R, ph, W), lambda b, h: (b, 0, h, 0, 0)),
            pl.BlockSpec((K, N), lambda b, h: (0, 0)),   # resident weight
            pl.BlockSpec((1, N), lambda b, h: (0, 0)),   # resident bias
        ],
        out_specs=pl.BlockSpec((1, rows, N), lambda b, h: (b * nhb + h, 0, 0)),
        compiler_params=pltpu.CompilerParams(
            dimension_semantics=("parallel", "parallel"),
            vmem_limit_bytes=vmem_limit,
        ),
        cost_estimate=pl.CostEstimate(
            flops=2 * B * Ho * Wo * K * N,
            transcendentals=0,
            bytes_accessed=B * C * H * W * bx + K * N * bc + B * Ho * Wo * N * bo,
        ),
    )(x5, w_mat, b_mat)

    return out.reshape(B, Ho * Wo, N)  # free reshape, exact (no slicing)


def _patch_embed_two_pass(x, weight, bias, ph, pw, compute_dtype, out_dtype):
    B, C, H, W = x.shape
    Ho, Wo = H // ph, W // pw
    N = weight.shape[0]
    K = C * ph * pw
    M = B * Ho * Wo
    budget, vmem_limit = _vmem_plan()
    bc = jnp.dtype(compute_dtype).itemsize
    bo = jnp.dtype(out_dtype).itemsize

    # XLA patchify pre-pass (one producer fusion). Cast to bf16 first so the
    # transpose moves half the bytes.
    xc = x.astype(compute_dtype)
    patches = xc.reshape(B, C, Ho, ph, Wo, pw)
    patches = patches.transpose(0, 2, 4, 1, 3, 5).reshape(M, K)

    # Lane-dense K padding: 128-aligned, bumped to 256 when <= ~12.5% extra.
    kp128 = _round_up(K, 128)
    kp256 = _round_up(K, 256)
    Kp = kp256 if kp256 * 8 <= kp128 * 9 else kp128

    w_mat = weight.reshape(N, K).T.astype(compute_dtype)
    w_p = jnp.pad(w_mat, ((0, Kp - K), (0, 0)))
    b_mat = bias.reshape(1, N).astype(jnp.float32)

    # M tile: multiples of 8 (128+ preferred), keep >= ~4 grid steps, stay
    # inside the per-generation VMEM budget (weight counted double-buffered).
    Nv = _round_up(N, 128)  # out/weight blocks lane-pad to 128 inside VMEM
    cap_tm = max(8, _round_up(_cdiv(M, 4), 8))
    tm = 8
    for cand in (1024, 512, 384, 256, 128, 64, 32, 16, 8):
        if cand > cap_tm:
            continue
        need = (2 * cand * Kp * bc      # patch tile, double-buffered
                + 2 * cand * Nv * bo    # output tile, double-buffered
                + 2 * Kp * Nv * bc      # resident weight (worst case 2 bufs)
                + (1 << 20))
        if need <= budget:
            tm = cand
            break

    Mp = _round_up(M, tm)
    patches_p = jnp.pad(patches, ((0, Mp - M), (0, Kp - K)))

    out = pl.pallas_call(
        _proj_kernel,
        out_shape=jax.ShapeDtypeStruct((Mp, N), out_dtype),
        grid=(Mp // tm,),
        in_specs=[
            pl.BlockSpec((tm, Kp), lambda i: (i, 0)),
            pl.BlockSpec((Kp, N), lambda i: (0, 0)),   # resident weight
            pl.BlockSpec((1, N), lambda i: (0, 0)),    # resident bias
        ],
        out_specs=pl.BlockSpec((tm, N), lambda i: (i, 0)),
        compiler_params=pltpu.CompilerParams(
            dimension_semantics=("parallel",),
            vmem_limit_bytes=vmem_limit,
        ),
        cost_estimate=pl.CostEstimate(
            flops=2 * Mp * Kp * N,
            transcendentals=0,
            bytes_accessed=Mp * Kp * bc + Kp * N * bc + Mp * N * bo,
        ),
    )(patches_p, w_p, b_mat)

    if Mp != M:
        out = out[:M]
    return out.reshape(B, Ho * Wo, N)


def patch_embed(x, weight, bias, patch_size, *, compute_dtype=jnp.bfloat16,
                out_dtype=None, fuse_patchify=None):
    """Conv2d(stride=kernel) patch embedding: x (B,C,H,W) -> (B, Ho*Wo, N).

    weight: (N, C, ph, pw) Conv2d weight; bias: (N,).
    out_dtype defaults to x.dtype (pass jnp.bfloat16 to halve HBM writeback
    when the consumer tolerates it).  MXU inputs are rounded to compute_dtype
    (bf16) with f32 accumulation, so results differ from a pure-f32 conv at
    the ~1e-3 level.
    fuse_patchify: None = try the fused (in-kernel patchify) path and fall
    back automatically (recommended; call eagerly so fallback can engage),
    True = require the fused path, False = force the two-pass path.
    """
    ph, pw = _to_2tuple(patch_size)
    B, C, H, W = x.shape
    assert H % ph == 0 and W % pw == 0, "image size must be divisible by patch size"
    out_dtype = x.dtype if out_dtype is None else jnp.dtype(out_dtype)

    if fuse_patchify is not False:
        try:
            out = _patch_embed_fused(x, weight, bias, ph, pw, compute_dtype, out_dtype)
            jax.block_until_ready(out)  # surface lowering/runtime errors here
            return out
        except Exception:
            if fuse_patchify:
                raise
            # Mosaic rejected the in-kernel relayout on this version/shape;
            # use the two-pass (XLA im2col + matmul kernel) path instead.
    return _patch_embed_two_pass(x, weight, bias, ph, pw, compute_dtype, out_dtype)


if __name__ == "__main__":
    # Small shapes consistent with the module: img_size=16, patch_size=4,
    # in_chans=4, embed_dim=32, batch=2.
    B, C, H, W = 2, 4, 16, 16
    patch = (4, 4)
    embed_dim = 32

    key = jax.random.PRNGKey(0)
    kx, kw, kb = jax.random.split(key, 3)
    x = jax.random.normal(kx, (B, C, H, W), dtype=jnp.float32)
    weight = jax.random.normal(kw, (embed_dim, C, patch[0], patch[1]),
                               dtype=jnp.float32) * 0.02
    bias = jax.random.normal(kb, (embed_dim,), dtype=jnp.float32) * 0.02

    # TODO(synk): norm_layer defaults to None in the module, so no LayerNorm is applied.
    y = patch_embed(x, weight, bias, patch)                         # fused (auto-fallback)
    y_two_pass = patch_embed(x, weight, bias, patch, fuse_patchify=False)
    jax.block_until_ready((y, y_two_pass))
    assert y.shape == (B, (H // patch[0]) * (W // patch[1]), embed_dim)
    assert y_two_pass.shape == y.shape

    # Reference 1: bf16-rounded inputs, high-precision conv (validates the
    # kernel matmul + bias exactly, independent of the bf16 input rounding).
    xb = x.astype(jnp.bfloat16).astype(jnp.float32)
    wb = weight.astype(jnp.bfloat16).astype(jnp.float32)
    ref_bf16 = jax.lax.conv_general_dilated(
        xb, wb, window_strides=patch, padding="VALID",
        dimension_numbers=("NCHW", "OIHW", "NCHW"),
        precision=jax.lax.Precision.HIGHEST)
    ref_bf16 = ref_bf16 + bias[None, :, None, None]
    ref_bf16 = ref_bf16.reshape(B, embed_dim, -1).transpose(0, 2, 1)

    # Reference 2: full-f32 conv, loose tolerance (bf16 input rounding).
    ref_f32 = jax.lax.conv_general_dilated(
        x, weight, window_strides=patch, padding="VALID",
        dimension_numbers=("NCHW", "OIHW", "NCHW"),
        precision=jax.lax.Precision.HIGHEST)
    ref_f32 = ref_f32 + bias[None, :, None, None]
    ref_f32 = ref_f32.reshape(B, embed_dim, -1).transpose(0, 2, 1)

    for out in (y, y_two_pass):
        assert jnp.allclose(out, ref_bf16, atol=2e-3, rtol=2e-3)
        assert jnp.allclose(out, ref_f32, atol=5e-2, rtol=5e-2)

    print("KERNEL_OK")
</pallas_src>

<mosaic_0001>
module attributes {stable_mosaic.version = 11 : i64} {
  func.func @kernel(%arg0: i32, %arg1: i32, %arg2: memref<1x4x2x4x16xf32, #tpu.memory_space<vmem>>, %arg3: memref<64x32xbf16, #tpu.memory_space<vmem>>, %arg4: memref<1x32xf32, #tpu.memory_space<vmem>>, %arg5: memref<1x8x32xf32, #tpu.memory_space<vmem>>) attributes {dimension_semantics = [#tpu.dimension_semantics<parallel>, #tpu.dimension_semantics<parallel>], iteration_bounds = array<i64: 2, 2>, scalar_prefetch = 0 : i64, scratch_operands = 0 : i64, tpu.core_type = #tpu.core_type<tc>, window_params = [{transform_indices = @transform_0, window_bounds = array<i64: 1, 4, 2, 4, 16>}, {pipeline_mode = #tpu.pipeline_mode<synchronous>, transform_indices = @transform_1, window_bounds = array<i64: 64, 32>}, {pipeline_mode = #tpu.pipeline_mode<synchronous>, transform_indices = @transform_2, window_bounds = array<i64: 1, 32>}, {transform_indices = @transform_3, window_bounds = array<i64: 1, 8, 32>}]} {
    %c0 = arith.constant 0 : index
    %c0_0 = arith.constant 0 : index
    %c0_1 = arith.constant 0 : index
    %c0_2 = arith.constant 0 : index
    %c0_3 = arith.constant 0 : index
    %0 = vector.load %arg2[%c0, %c0_0, %c0_1, %c0_2, %c0_3] : memref<1x4x2x4x16xf32, #tpu.memory_space<vmem>>, vector<1x4x2x4x16xf32>
    %1 = vector.shape_cast %0 : vector<1x4x2x4x16xf32> to vector<4x2x4x16xf32>
    %2 = vector.shape_cast %1 : vector<4x2x4x16xf32> to vector<4x2x4x4x4xf32>
    %3 = tpu.transpose %2, [1, 3, 0, 2, 4] : vector<4x2x4x4x4xf32> -> vector<2x4x4x4x4xf32>
    %4 = vector.shape_cast %3 : vector<2x4x4x4x4xf32> to vector<8x64xf32>
    %5 = arith.truncf %4 : vector<8x64xf32> to vector<8x64xbf16>
    %c0_4 = arith.constant 0 : index
    %c0_5 = arith.constant 0 : index
    %6 = vector.load %arg3[%c0_4, %c0_5] : memref<64x32xbf16, #tpu.memory_space<vmem>>, vector<64x32xbf16>
    %cst = arith.constant dense<0.000000e+00> : vector<8x32xf32>
    %7 = tpu.matmul %5, %6, %cst {dimension_numbers = #tpu.dot_dimension_numbers<[1], [0], [0], [1], [0, 0, 1, 1], [], []>} : vector<8x64xbf16>, vector<64x32xbf16>, vector<8x32xf32> -> vector<8x32xf32>
    %c0_6 = arith.constant 0 : index
    %c0_7 = arith.constant 0 : index
    %8 = vector.load %arg4[%c0_6, %c0_7] : memref<1x32xf32, #tpu.memory_space<vmem>>, vector<1x32xf32>
    %9 = vector.broadcast %8 : vector<1x32xf32> to vector<8x32xf32>
    %10 = arith.addf %7, %9 : vector<8x32xf32>
    %c0_8 = arith.constant 0 : index
    %c0_9 = arith.constant 0 : index
    %c0_10 = arith.constant 0 : index
    %11 = vector.load %arg5[%c0_8, %c0_9, %c0_10] : memref<1x8x32xf32, #tpu.memory_space<vmem>>, vector<1x8x32xf32>
    %12 = vector.shape_cast %11 : vector<1x8x32xf32> to vector<8x32xf32>
    %13 = vector.shape_cast %10 : vector<8x32xf32> to vector<1x8x32xf32>
    tpu.vector_store %arg5[%c0_8, %c0_9, %c0_10], %13 {strides = array<i32>} : memref<1x8x32xf32, #tpu.memory_space<vmem>>, vector<1x8x32xf32>,
    return
  }
  func.func @transform_0(%arg0: i32, %arg1: i32) -> (i32, i32, i32, i32, i32) {
    %c0_i32 = arith.constant 0 : i32
    %c0_i32_0 = arith.constant 0 : i32
    %c0_i32_1 = arith.constant 0 : i32
    %c0_i32_2 = arith.constant 0 : i32
    return %arg0, %c0_i32, %arg1, %c0_i32_0, %c0_i32_1 : i32, i32, i32, i32, i32
  }
  func.func @transform_1(%arg0: i32, %arg1: i32) -> (i32, i32) {
    %c0_i32 = arith.constant 0 : i32
    %c0_i32_0 = arith.constant 0 : i32
    %c0_i32_1 = arith.constant 0 : i32
    return %c0_i32, %c0_i32_0 : i32, i32
  }
  func.func @transform_2(%arg0: i32, %arg1: i32) -> (i32, i32) {
    %c0_i32 = arith.constant 0 : i32
    %c0_i32_0 = arith.constant 0 : i32
    %c0_i32_1 = arith.constant 0 : i32
    return %c0_i32, %c0_i32_0 : i32, i32
  }
  func.func @transform_3(%arg0: i32, %arg1: i32) -> (i32, i32, i32) {
    %c2_i32 = arith.constant 2 : i32
    %0 = arith.muli %arg0, %c2_i32 : i32
    %1 = arith.addi %0, %arg1 : i32
    %c0_i32 = arith.constant 0 : i32
    %c0_i32_0 = arith.constant 0 : i32
    %c0_i32_1 = arith.constant 0 : i32
    return %1, %c0_i32, %c0_i32_0 : i32, i32, i32
  }
}

module attributes {stable_mosaic.version = 11 : i64} {
  func.func @_proj_kernel(%arg0: i32, %arg1: memref<8x128xbf16, #tpu.memory_space<vmem>>, %arg2: memref<128x32xbf16, #tpu.memory_space<vmem>>, %arg3: memref<1x32xf32, #tpu.memory_space<vmem>>, %arg4: memref<8x32xf32, #tpu.memory_space<vmem>>) attributes {dimension_semantics = [#tpu.dimension_semantics<parallel>], iteration_bounds = array<i64: 4>, scalar_prefetch = 0 : i64, scratch_operands = 0 : i64, tpu.core_type = #tpu.core_type<tc>, window_params = [{transform_indices = @transform_0, window_bounds = array<i64: 8, 128>}, {pipeline_mode = #tpu.pipeline_mode<synchronous>, transform_indices = @transform_1, window_bounds = array<i64: 128, 32>}, {pipeline_mode = #tpu.pipeline_mode<synchronous>, transform_indices = @transform_2, window_bounds = array<i64: 1, 32>}, {transform_indices = @transform_3, window_bounds = array<i64: 8, 32>}]} {
    %c0 = arith.constant 0 : index
    %c0_0 = arith.constant 0 : index
    %0 = vector.load %arg1[%c0, %c0_0] : memref<8x128xbf16, #tpu.memory_space<vmem>>, vector<8x128xbf16>
    %c0_1 = arith.constant 0 : index
    %c0_2 = arith.constant 0 : index
    %1 = vector.load %arg2[%c0_1, %c0_2] : memref<128x32xbf16, #tpu.memory_space<vmem>>, vector<128x32xbf16>
    %cst = arith.constant dense<0.000000e+00> : vector<8x32xf32>
    %2 = tpu.matmul %0, %1, %cst {dimension_numbers = #tpu.dot_dimension_numbers<[1], [0], [0], [1], [0, 0, 1, 1], [], []>} : vector<8x128xbf16>, vector<128x32xbf16>, vector<8x32xf32> -> vector<8x32xf32>
    %c0_3 = arith.constant 0 : index
    %c0_4 = arith.constant 0 : index
    %3 = vector.load %arg3[%c0_3, %c0_4] : memref<1x32xf32, #tpu.memory_space<vmem>>, vector<1x32xf32>
    %4 = vector.broadcast %3 : vector<1x32xf32> to vector<8x32xf32>
    %5 = arith.addf %2, %4 : vector<8x32xf32>
    %c0_5 = arith.constant 0 : index
    %c0_6 = arith.constant 0 : index
    %6 = vector.load %arg4[%c0_5, %c0_6] : memref<8x32xf32, #tpu.memory_space<vmem>>, vector<8x32xf32>
    tpu.vector_store %arg4[%c0_5, %c0_6], %5 {strides = array<i32>} : memref<8x32xf32, #tpu.memory_space<vmem>>, vector<8x32xf32>,
    return
  }
  func.func @transform_0(%arg0: i32) -> (i32, i32) {
    %c0_i32 = arith.constant 0 : i32
    %c0_i32_0 = arith.constant 0 : i32
    return %arg0, %c0_i32 : i32, i32
  }
  func.func @transform_1(%arg0: i32) -> (i32, i32) {
    %c0_i32 = arith.constant 0 : i32
    %c0_i32_0 = arith.constant 0 : i32
    %c0_i32_1 = arith.constant 0 : i32
    return %c0_i32, %c0_i32_0 : i32, i32
  }
  func.func @transform_2(%arg0: i32) -> (i32, i32) {
    %c0_i32 = arith.constant 0 : i32
    %c0_i32_0 = arith.constant 0 : i32
    %c0_i32_1 = arith.constant 0 : i32
    return %c0_i32, %c0_i32_0 : i32, i32
  }
  func.func @transform_3(%arg0: i32) -> (i32, i32) {
    %c0_i32 = arith.constant 0 : i32
    %c0_i32_0 = arith.constant 0 : i32
    return %arg0, %c0_i32 : i32, i32
  }
}

</mosaic_0001>

<bundles_post_ra>
// kernel: tpu_custom_call.1
= control target key start
LH: loop header
LB: loop body
LE: loop exit
PB: predicated region body
PF: predicated region fallthrough
CT: control target
= control target key end

     0   :  { %8 = vsyncpa [#allocation3], 0  ;;  %s665_s0 = inlined_call_operand.vmem [shape: bf16[32,128], index: 0, kind: input, shape index: {}]   ;;  %s666_s1 = inlined_call_operand.vmem [shape: bf16[128,32], index: 1, kind: input, shape index: {}]   ;;  %s667_s2 = inlined_call_operand.vmem [shape: f32[1,32], index: 2, kind: input, shape index: {}]   ;;  %s668_s3 = inlined_call_operand.hbm [shape: f32[32,32], index: 3, kind: output, shape index: {}]  }
   0x1   :  { %10 = vsyncpa [#allocation3 + $0x1], 0  ;;  %s538_s12 = smov 0   ;;  %s540_s13 = smov 0  }
   0x2   :  { %s542_s14 = smov 0   ;;  %s544_s15 = smov 0  }
   0x3 LB: > { %s559_s16 = sadd.s32 4294967295, %s513_s15   ;;  %s354_s17 = sadd.s32 4294967294, %s513_s15   ;;  %s513_s15 = sphi %s544_s15, %s674_s15   ;;  %s509_s14 = sphi %s542_s14, %s673_s14   ;;  %s505_s13 = sphi %s540_s13, %s672_s13   ;;  %s501_s12 = sphi %s538_s12, %s671_s12  }
   0x4   : > { %s563_s18 = sadd.s32 1, %s513_s15   ;;  %s91_s19 = sadd.s32 1, %s509_s14 }
   0x5   : > { %s88_s20 = ssub.s32 %s513_s15, %s563_s18  ;;  %p101_p0 = scmp.ne.s32.totalorder %s509_s14, %s505_s13 }
   0x6   : > { %p89_p1 = scmp.eq.s32.totalorder %s88_s20, 0  ;;  %p102_p2 = scmp.eq.s32.totalorder %s559_s16, 3 }
   0x7   : > { %p107_p3 = scmp.ne.s32.totalorder %s505_s13, %s501_s12  ;;  %p108_p4 = scmp.eq.s32.totalorder %s354_s17, 3 }
   0x8   : > { %s574_s21 = scalar_select %p89_p1, %s509_s14, %s91_s19  }
   0x9   : > { %p576_p5 = por %p102_p2, %p101_p0  ;;  %p580_p6 = por %p108_p4, %p107_p3 }
   0xa   : > { %p357_p7 = scmp.ge.s32.totalorder %s513_s15, 1  ;;  %p139_p8 = scmp.lt.s32.totalorder %s513_s15, 5 }
   0xc   : > { %p140_p9 = pnand %p357_p7, %p139_p8 }
   0xd   : > { %v443_v0 = vld [vmem:[%s666_s1] sm:$0xff] (!%p140_p9)   ;;  %v515_v1 = vmov (!%p140_p9), 0.0   ;;  %v444_v2 = vld [vmem:[%s666_s1 + $0x8] sm:$0xff] (!%p140_p9)   ;;  %vm516_vm0 = vmmov (!%p140_p9), 0   ;;  %v445_v3 = vld [vmem:[%s666_s1 + $0x10] sm:$0xff] (!%p140_p9)   ;;  %p162_p10 = scmp.lt.s32.totalorder (!%p140_p9), %s559_s16, 3 }
   0xe   : > { %143 = sbr.rel (%p140_p9) target bundleno = 274 (0x112), region = 32  ;;  %382 = vmatprep.subr.bf16.mxu0 (!%p140_p9), %v515_v1  ;;  %398 = vmatprep.mubr.msk.bf16.mxu0 (!%p140_p9), %vm516_vm0, %v515_v1  ;;  %v446_v4 = vld [vmem:[%s666_s1 + $0x18] sm:$0xff] (!%p140_p9)   ;;  %v447_v5 = vld [vmem:[%s666_s1 + $0x20] sm:$0xff] (!%p140_p9)   ;;  %v448_v6 = vld [vmem:[%s666_s1 + $0x28] sm:$0xff] (!%p140_p9)   ;;  %s159_s27 = sand.u32 (!%p140_p9), 1, %s505_s13   ;;  %vm279_vm1 = vcmask (!%p140_p9), 261120  }
   0xf   : > { %383 = vmatpush3.bf16.msra.mxu0 (!%p140_p9), %v443_v0  ;;  %v449_v7 = vld [vmem:[%s666_s1 + $0x30] sm:$0xff] (!%p140_p9)   ;;  %v450_v8 = vld [vmem:[%s666_s1 + $0x38] sm:$0xff] (!%p140_p9)   ;;  %s358_s28 = sshll.u32 (!%p140_p9), %s159_s27, 3  ;;  %v360_v10 = vld [vmem:[%s667_s2] ss:$0 sm:$0xff] (!%p140_p9)  ;;  %s370_s4 = sshll.u32 (!%p140_p9), %s559_s16, 7 }
  0x10   : > { %384 = vmatprep.subr.bf16.mxu0 (!%p140_p9), %v515_v1  ;;  %s161_s5 = scalar_lea.vmem (!%p140_p9), [#allocation2], %s358_s28  ;;  %s517_s11 = smov (!%p140_p9), [#allocation2]  }
  0x11   : > { %s295_s6 = sshll.u32 (!%p140_p9), %s161_s5, 4  ;;  %s625_s6 = int_to_ptr.vmem [resolvable:$true] %s295_s6 }
  0x12   : > { %s451_s10 = scalar_lea.vmem (!%p140_p9), %s625_s6, 128 }
  0x13   : > { %385 = vmatpush3.bf16.msra.mxu0 (!%p140_p9), %v444_v2  ;;  %p452_p11 = scmp.ne.s32.totalorder (!%p140_p9), %s625_s6, %s451_s10 }
  0x14   : > { %386 = vmatprep.subr.bf16.mxu0 (!%p140_p9), %v515_v1 }
  0x15   : > { %s163_s9 = scalar_select %p162_p10, %s559_s16, 3 }
  0x16   : > { %s282_s16 = scalar_lea.sflag [#allocation3], %s159_s27  ;;  %p453_p12 = pnand %p452_p11, %p576_p5 }
  0x17   : > { %387 = vmatpush3.bf16.msra.mxu0 %v445_v3  ;;  %s359_s17 = sshll.u32 %s163_s9, 2  ;;  %s623_s9 = scalar_lea.hbm %s668_s3, %s370_s4 }
  0x18   : > { %388 = vmatprep.subr.bf16.mxu0 %v515_v1  ;;  %s165_s26 = scalar_lea.vmem %s665_s0, %s359_s17  ;;  %p454_p13 = pneg %p453_p12 }
  0x19   : > { %v167_v9 = vld [vmem:[%s165_s26] sm:$0xf]  ;;  %s455_s17 = sshll.u32 %s517_s11, 4  ;;  %s456_s17 = int_to_ptr.vmem [resolvable:$false] %s455_s17 }
  0x1a   : > { %s457_s19 = scalar_lea.vmem %s456_s17, 256  ;;  %p458_p0 = scmp.lt.s32.totalorder %s625_s6, %s456_s17 }
  0x1b   : > { %389 = vmatpush3.bf16.msra.mxu0 %v446_v4  ;;  %p459_p1 = scmp.lt.s32.totalorder %s457_s19, %s451_s10 }
  0x1c   : > { %390 = vmatprep.subr.bf16.mxu0 %v515_v1 }
  0x1d   : > { %p460_p2 = por %p459_p1, %p458_p0 }
  0x1f   : > { %391 = vmatpush3.bf16.msra.mxu0 %v447_v5  ;;  %p461_p3 = pnand %p460_p2, %p454_p13 }
  0x20   : > { %392 = vmatprep.subr.bf16.mxu0 %v515_v1 }
  0x23   : > { %393 = vmatpush3.bf16.msra.mxu0 %v448_v6 }
  0x24   : > { %394 = vmatprep.subr.bf16.mxu0 %v515_v1 }
  0x27   : > { %395 = vmatpush3.bf16.msra.mxu0 %v449_v7 }
  0x28   : > { %396 = vmatprep.subr.bf16.mxu0 %v515_v1 }
  0x2b   : > { %397 = vmatpush3.bf16.msra.mxu0 %v450_v8 }
  0x2e   : > { %399 = vmatmul.mubr.bf16.vlgmr.msra.gmra.mrb[0].mxu0 %v167_v9 }
 0x101   : > { %v273_v11 = vpop.f32.mrb[0].mxu0 }
 0x102   : > { %v274_v12 = vadd.f32 %v360_v10, %v273_v11  ;;  %v400_v13 = vpop.f32.mrb[1].mxu0 }
 0x103   : > { %v276_v14 = vpop.f32.mrb[2].mxu0 }
 0x104   : > { %v401_v15 = vpop.f32.mrb[3].mxu0  ;;  %280 = vst.msk [vmem:[%s161_s5] sm:$0xff] %vm279_vm1, %v274_v12 }
 0x105   : > { %464 = shalt.err (!%p461_p3)
}
 0x106   : > { %s465_s20 = scalar_lea.hbm %s623_s9, 128  ;;  %s469_s26 = scalar_lea.hbm %s668_s3, 512 }
 0x107   : > { %p466_p4 = scmp.ne.s32.totalorder %s623_s9, %s465_s20  ;;  %p470_p9 = scmp.lt.u32.totalorder %s623_s9, %s668_s3 }
 0x108   : > { %p471_p10 = scmp.lt.u32.totalorder %s469_s26, %s465_s20  ;;  %p473_p12 = scmp.lt.u32.totalorder %s465_s20, %s623_s9 }
 0x109   : > { %p467_p7 = pnand %p466_p4, %p576_p5 }
 0x10a   : > { %p472_p11 = por %p471_p10, %p470_p9 }
 0x10b   : > { %p468_p8 = pneg %p467_p7 }
 0x10c   : > { %p474_p13 = por %p473_p12, %p472_p11 }
 0x10e   : > { %p475_p0 = pnand %p474_p13, %p468_p8 }
 0x110   : > { %478 = shalt.err (!%p475_p0)
}
 0x111   : > { %402 = dma.vmem_to_hbm [thread:$0]  (%p576_p5), %s625_s6, 128, %s623_s9, %s282_s16  }
 0x112 PF: > { %p408_p1 = scmp.ge.s32.totalorder %s513_s15, 2  ;;  %s307_s29 = sand.u32 1, %s501_s12  }
 0x113   : > { %s308_s30 = scalar_lea.sflag [#allocation3], %s307_s29 }
 0x114   : > { %p405_p2 = pnand %p408_p1, %p580_p6 }
 0x116   : > { %496 = dma.done.wait (!%p405_p2), %s308_s30, 128  }
 0x117   : > { %498 = vsyncadd (!%p405_p2), %s308_s30, 4294967168  ;;  %p13_p3 = scmp.ge.s32.totalorder %s563_s18, 6   ;;  %s671_s12 = smov %s505_s13 }
 0x118   : > { %s672_s13 = smov %s509_s14  ;;  %s673_s14 = smov %s574_s21 }
 0x119   : > { %s674_s15 = smov %s563_s18  ;;  %15 = sbr.rel (!%p13_p3) target bundleno = 3 (0x3), region = 67 }
 0x120   :  { %313 = vsyncpa [#allocation3], 1 }
 0x121   :  { %315 = vsyncpa [#allocation3 + $0x1], 1 }

</bundles_post_ra>
